<compile_context>
chip_gen: v6e
topology: v6e:2x2x1
jax: 0.10.0
libtpu: 0.0.40
codegen_flags: <defaults>
</compile_context>

<pallas_src>
import functools
import math

import jax
import jax.numpy as jnp
from jax.experimental import pallas as pl
from jax.experimental.pallas import tpu as pltpu

R1 = 1.1
LANES = 128
SUBLANES = 8
MIN_BLOCK_ELEMS = SUBLANES * LANES  # 1024


def _new_loss_kernel(x_ref, t_ref, o_ref, *, r1, n_rows, tr, needs_mask):
    """Fold one (tr, 128) tile of 255**(r1-1)*d**(r1+1) into the resident (8,128) output."""
    i = pl.program_id(0)

    @pl.when(i == 0)
    def _init():
        o_ref[...] = jnp.zeros_like(o_ref)

    d = jnp.abs(x_ref[...].astype(jnp.float32) - t_ref[...].astype(jnp.float32))

    if needs_mask:
        # Ragged last tile: rows >= n_rows were never DMA'd (unspecified) -> zero them.
        row = i * tr + jax.lax.broadcasted_iota(jnp.int32, (tr, LANES), 0)
        d = jnp.where(row < n_rows, d, 0.0)

    # (d*255)**r1 / 255 * d  ==  exp((r1+1)*log(d) + (r1-1)*log(255))
    c = (r1 - 1.0) * math.log(255.0)
    y = jnp.exp((r1 + 1.0) * jnp.log(d) + c)
    # Cheap VPU select: d == 0 (true zeros, lane padding, masked tail) contributes
    # exactly 0 even if an exp/log approximation misbehaves at 0.
    y = jnp.where(d > 0.0, y, 0.0)

    if tr % (4 * SUBLANES) == 0:
        # 4 independent accumulation chains, then collapse (32,128) -> (8,128).
        part = y.reshape(-1, 4 * SUBLANES, LANES).sum(axis=0)
        part = part.reshape(4, SUBLANES, LANES).sum(axis=0)
    else:
        part = y.reshape(-1, SUBLANES, LANES).sum(axis=0)

    o_ref[...] += part


def new_loss(inp, target, *, r1=R1, tile_rows=1024):
    """sum((|inp-target|*255)**r1 / 255 * |inp-target|) as a Pallas TPU reduction.

    Accepts any shape; bf16 inputs are kept bf16 through the DMA and cast in-kernel.
    """
    assert inp.shape == target.shape, "input/target shape mismatch"
    n_elem = math.prod(inp.shape) if inp.shape else 1

    xf = jnp.ravel(inp)
    tf = jnp.ravel(target)

    # Zero-copy path whenever n_elem is a multiple of 1024 (8 sublanes x 128 lanes):
    # ravel/reshape are layout-preserving.  Only ragged sizes pay a small pad
    # (to the next 1024 multiple); padded zeros contribute exactly 0.
    # TODO(synk): a fully copy-free ragged path would need 1-D blocks or manual DMA.
    pad = (-n_elem) % MIN_BLOCK_ELEMS
    if pad:
        xf = jnp.pad(xf, (0, pad))
        tf = jnp.pad(tf, (0, pad))
    n_rows = (n_elem + pad) // LANES  # multiple of 8
    x2 = xf.reshape(n_rows, LANES)
    t2 = tf.reshape(n_rows, LANES)

    # Tile rows: multiple of 8, never larger than the array, so the only ragged
    # block is the last one (handled by in-kernel masking -- no tile-multiple pad,
    # no chunk round-up, no zero-DMA tiles).
    tr = min(int(tile_rows), n_rows)
    tr = max(SUBLANES, (tr // SUBLANES) * SUBLANES)
    n_tiles = -(-n_rows // tr)
    needs_mask = (n_rows % tr) != 0

    itemsize = jnp.dtype(x2.dtype).itemsize

    partials = pl.pallas_call(
        functools.partial(
            _new_loss_kernel, r1=float(r1), n_rows=n_rows, tr=tr, needs_mask=needs_mask
        ),
        out_shape=jax.ShapeDtypeStruct((SUBLANES, LANES), jnp.float32),
        grid_spec=pltpu.PrefetchScalarGridSpec(
            num_scalar_prefetch=0,
            grid=(n_tiles,),
            in_specs=[
                pl.BlockSpec((tr, LANES), lambda i: (i, 0)),
                pl.BlockSpec((tr, LANES), lambda i: (i, 0)),
            ],
            out_specs=pl.BlockSpec((SUBLANES, LANES), lambda i: (0, 0)),
        ),
        compiler_params=pltpu.CompilerParams(
            dimension_semantics=("arbitrary",),
        ),
        cost_estimate=pl.CostEstimate(
            flops=6 * n_elem,
            transcendentals=2 * n_elem,
            bytes_accessed=2 * n_rows * LANES * itemsize + SUBLANES * LANES * 4,
        ),
    )(x2, t2)

    # Tiny (8,128) final reduce in plain XLA.
    return jnp.sum(partials)


def _reference(inp, target, r1=R1):
    d = jnp.abs(inp.astype(jnp.float32) - target.astype(jnp.float32))
    y = (d * 255.0) ** r1 / 255.0 * d
    return jnp.sum(y)


if __name__ == "__main__":
    key = jax.random.PRNGKey(0)
    k1, k2, k3, k4, k5, k6, k7, k8 = jax.random.split(key, 8)

    # NCHW, matching the PyTorch module's conv-style inputs.
    B, C, H, W = 2, 4, 16, 16
    x = jax.random.uniform(k1, (B, C, H, W), dtype=jnp.float32)
    t = jax.random.uniform(k2, (B, C, H, W), dtype=jnp.float32)

    loss = new_loss(x, t)
    jax.block_until_ready(loss)
    ref = _reference(x, t)
    assert jnp.allclose(loss, ref, rtol=1e-4, atol=1e-4), (loss, ref)

    # Multi-tile accumulation into the resident output block.
    loss_multi = new_loss(x, t, tile_rows=8)
    jax.block_until_ready(loss_multi)
    assert jnp.allclose(loss_multi, ref, rtol=1e-4, atol=1e-4), (loss_multi, ref)

    # Ragged last tile -> in-kernel row masking (24 rows with 16-row tiles).
    xm = jax.random.uniform(k3, (1, 3, 32, 32), dtype=jnp.float32)
    tm = jax.random.uniform(k4, (1, 3, 32, 32), dtype=jnp.float32)
    loss_mask = new_loss(xm, tm, tile_rows=16)
    jax.block_until_ready(loss_mask)
    ref_mask = _reference(xm, tm)
    assert jnp.allclose(loss_mask, ref_mask, rtol=1e-4, atol=1e-4), (loss_mask, ref_mask)

    # Element count not a multiple of 1024 -> small pad path.
    xp = jax.random.uniform(k5, (2, 3, 15, 17), dtype=jnp.float32)
    tp = jax.random.uniform(k6, (2, 3, 15, 17), dtype=jnp.float32)
    loss_pad = new_loss(xp, tp)
    jax.block_until_ready(loss_pad)
    ref_pad = _reference(xp, tp)
    assert jnp.allclose(loss_pad, ref_pad, rtol=1e-4, atol=1e-4), (loss_pad, ref_pad)

    # Larger slab exercising the two-stage (32,128)->(8,128) fold (tr % 32 == 0).
    xb = jax.random.uniform(k7, (2, 4, 32, 64), dtype=jnp.float32)
    tb = jax.random.uniform(k8, (2, 4, 32, 64), dtype=jnp.float32)
    loss_big = new_loss(xb, tb)
    jax.block_until_ready(loss_big)
    ref_big = _reference(xb, tb)
    assert jnp.allclose(loss_big, ref_big, rtol=1e-4, atol=1e-4), (loss_big, ref_big)

    print("KERNEL_OK")
</pallas_src>

<mosaic_0001>
module attributes {stable_mosaic.version = 11 : i64} {
  func.func @_new_loss_kernel(%arg0: i32, %arg1: memref<16x128xf32, #tpu.memory_space<vmem>>, %arg2: memref<16x128xf32, #tpu.memory_space<vmem>>, %arg3: memref<8x128xf32, #tpu.memory_space<vmem>>) attributes {dimension_semantics = [#tpu.dimension_semantics<arbitrary>], iteration_bounds = array<i64: 1>, scalar_prefetch = 0 : i64, scratch_operands = 0 : i64, tpu.core_type = #tpu.core_type<tc>, window_params = [{transform_indices = @transform_0, window_bounds = array<i64: 16, 128>}, {transform_indices = @transform_1, window_bounds = array<i64: 16, 128>}, {pipeline_mode = #tpu.pipeline_mode<synchronous>, transform_indices = @transform_2, window_bounds = array<i64: 8, 128>}]} {
    %c0_i32 = arith.constant 0 : i32
    %0 = arith.cmpi eq, %arg0, %c0_i32 : i32
    %1 = arith.extui %0 : i1 to i32
    %c0_i32_0 = arith.constant 0 : i32
    %2 = arith.cmpi ne, %1, %c0_i32_0 : i32
    scf.if %2 {
      %cst_12 = arith.constant 0.000000e+00 : f32
      %22 = vector.broadcast %cst_12 : f32 to vector<8x128xf32>
      %c0_13 = arith.constant 0 : index
      %c0_14 = arith.constant 0 : index
      %23 = vector.load %arg3[%c0_13, %c0_14] : memref<8x128xf32, #tpu.memory_space<vmem>>, vector<8x128xf32>
      tpu.vector_store %arg3[%c0_13, %c0_14], %22 {strides = array<i32>} : memref<8x128xf32, #tpu.memory_space<vmem>>, vector<8x128xf32>,
    } else {
    }
    %c0 = arith.constant 0 : index
    %c0_1 = arith.constant 0 : index
    %3 = vector.load %arg1[%c0, %c0_1] : memref<16x128xf32, #tpu.memory_space<vmem>>, vector<16x128xf32>
    %c0_2 = arith.constant 0 : index
    %c0_3 = arith.constant 0 : index
    %4 = vector.load %arg2[%c0_2, %c0_3] : memref<16x128xf32, #tpu.memory_space<vmem>>, vector<16x128xf32>
    %5 = arith.subf %3, %4 : vector<16x128xf32>
    %6 = math.absf %5 : vector<16x128xf32>
    %7 = math.log %6 : vector<16x128xf32>
    %cst = arith.constant 2.100000e+00 : f32
    %8 = vector.broadcast %cst : f32 to vector<16x128xf32>
    %9 = arith.mulf %8, %7 : vector<16x128xf32>
    %cst_4 = arith.constant 0.554126382 : f32
    %10 = vector.broadcast %cst_4 : f32 to vector<16x128xf32>
    %11 = arith.addf %9, %10 : vector<16x128xf32>
    %12 = math.exp %11 : vector<16x128xf32>
    %cst_5 = arith.constant 0.000000e+00 : f32
    %13 = vector.broadcast %cst_5 : f32 to vector<16x128xf32>
    %14 = arith.cmpf ogt, %6, %13 : vector<16x128xf32>
    %cst_6 = arith.constant 0.000000e+00 : f32
    %15 = vector.broadcast %cst_6 : f32 to vector<16x128xf32>
    %16 = arith.select %14, %12, %15 : vector<16x128xi1>, vector<16x128xf32>
    %17 = vector.shape_cast %16 : vector<16x128xf32> to vector<2x8x128xf32>
    %cst_7 = arith.constant dense<0.000000e+00> : vector<8x128xf32>
    %18 = vector.multi_reduction <add>, %17, %cst_7 [0] : vector<2x8x128xf32> to vector<8x128xf32>
    %c0_8 = arith.constant 0 : index
    %c0_9 = arith.constant 0 : index
    %19 = vector.load %arg3[%c0_8, %c0_9] : memref<8x128xf32, #tpu.memory_space<vmem>>, vector<8x128xf32>
    %20 = arith.addf %19, %18 : vector<8x128xf32>
    %c0_10 = arith.constant 0 : index
    %c0_11 = arith.constant 0 : index
    %21 = vector.load %arg3[%c0_10, %c0_11] : memref<8x128xf32, #tpu.memory_space<vmem>>, vector<8x128xf32>
    tpu.vector_store %arg3[%c0_10, %c0_11], %20 {strides = array<i32>} : memref<8x128xf32, #tpu.memory_space<vmem>>, vector<8x128xf32>,
    return
  }
  func.func @transform_0(%arg0: i32) -> (i32, i32) {
    %c0_i32 = arith.constant 0 : i32
    %c0_i32_0 = arith.constant 0 : i32
    return %arg0, %c0_i32 : i32, i32
  }
  func.func @transform_1(%arg0: i32) -> (i32, i32) {
    %c0_i32 = arith.constant 0 : i32
    %c0_i32_0 = arith.constant 0 : i32
    return %arg0, %c0_i32 : i32, i32
  }
  func.func @transform_2(%arg0: i32) -> (i32, i32) {
    %c0_i32 = arith.constant 0 : i32
    %c0_i32_0 = arith.constant 0 : i32
    %c0_i32_1 = arith.constant 0 : i32
    return %c0_i32, %c0_i32_0 : i32, i32
  }
}

</mosaic_0001>

<bundles_post_ra>
// kernel: tpu_custom_call.1
= control target key start
LH: loop header
LB: loop body
LE: loop exit
PB: predicated region body
PF: predicated region fallthrough
CT: control target
= control target key end

     0   :  { %7 = vsyncpa [#allocation3], 0  ;;  %s198_s0 = inlined_call_operand.hbm [shape: f32[16,128], index: 0, kind: input, shape index: {}]   ;;  %s199_s1 = inlined_call_operand.hbm [shape: f32[16,128], index: 1, kind: input, shape index: {}]   ;;  %s200_s2 = inlined_call_operand.hbm [shape: f32[8,128], index: 2, kind: output, shape index: {}]  }
   0x1   :  { %8 = vsyncpa [#allocation6], 0 }
   0x2   :  { %9 = vsyncpa [#allocation4], 0  ;;  %s169_s9 = smov [#allocation2]  }
   0x3   :  { %s15_s10 = sshll.u32 %s169_s9, 4  ;;  %s16_s10 = int_to_ptr.vmem [resolvable:$true] %s15_s10 }
   0x4   :  { %s111_s11 = scalar_lea.vmem %s16_s10, 256  ;;  %p116_p1 = scmp.lt.s32.totalorder %s16_s10, %s16_s10 }
   0x5   :  { %p112_p0 = scmp.ne.s32.totalorder %s16_s10, %s111_s11  ;;  %p117_p2 = scmp.lt.s32.totalorder %s111_s11, %s111_s11 }
   0x7   :  { %p118_p3 = por %p117_p2, %p116_p1 }
   0x9   :  { %p119_p4 = pnand %p118_p3, %p112_p0 }
   0xb   :  { %122 = shalt.err (!%p119_p4)
}
   0xc   :  { %s170_s12 = smov 128   ;;  %s171_s13 = smov 8  }
   0xd   :  { %21 = dma.hbm_to_vmem [thread:$0]  %s198_s0, 256, %s16_s10, [#allocation3], %s170_s12, %s170_s12, %s171_s13  }
   0xe   :  { %s172_s16 = smov [#allocation5]  }
   0xf   :  { %s27_s17 = sshll.u32 %s172_s16, 4  ;;  %s28_s17 = int_to_ptr.vmem [resolvable:$true] %s27_s17 }
  0x10   :  { %s131_s18 = scalar_lea.vmem %s28_s17, 256  ;;  %p136_p6 = scmp.lt.s32.totalorder %s28_s17, %s28_s17 }
  0x11   :  { %p132_p5 = scmp.ne.s32.totalorder %s28_s17, %s131_s18  ;;  %p137_p7 = scmp.lt.s32.totalorder %s131_s18, %s131_s18 }
  0x13   :  { %p138_p8 = por %p137_p7, %p136_p6 }
  0x15   :  { %p139_p9 = pnand %p138_p8, %p132_p5 }
  0x17   :  { %142 = shalt.err (!%p139_p9)
}
  0x18   :  { %33 = dma.hbm_to_vmem [thread:$0]  %s199_s1, 256, %s28_s17, [#allocation6], %s170_s12, %s170_s12, %s171_s13  }
  0x19   :  { %163 = dma.done.wait [#allocation3], 256  }
  0x1a   :  { %164 = vsyncadd [#allocation3], 4294967040 }
  0x1b   :  { %165 = dma.done.wait [#allocation6], 256  }
  0x1c   :  { %166 = vsyncadd [#allocation6], 4294967040  ;;  %v45_v0 = vld [vmem:[#allocation2] sm:$0xff]  ;;  %v46_v1 = vld [vmem:[#allocation2 + $0x8] sm:$0xff]  ;;  %s173_s0 = smov [#allocation7]  }
  0x1d   :  { %v47_v2 = vld [vmem:[#allocation5] sm:$0xff]  ;;  %v48_v3 = vld [vmem:[#allocation5 + $0x8] sm:$0xff]  ;;  %s79_s1 = sshll.u32 %s173_s0, 4  ;;  %s80_s1 = int_to_ptr.vmem [resolvable:$true] %s79_s1 }
  0x1e   :  { %v49_v4 = vsub.f32 %v45_v0, %v47_v2  ;;  %v50_v5 = vsub.f32 %v46_v1, %v48_v3  ;;  %s143_s21 = scalar_lea.vmem %s80_s1, 128  ;;  %p148_p11 = scmp.lt.s32.totalorder %s80_s1, %s80_s1 }
  0x1f   :  { %p144_p10 = scmp.ne.s32.totalorder %s80_s1, %s143_s21  ;;  %p149_p12 = scmp.lt.s32.totalorder %s143_s21, %s143_s21 }
  0x20   :  { %v51_v6 = vand.u32 2147483647, %v49_v4  ;;  %v52_v7 = vand.u32 2147483647, %v50_v5 }
  0x21   :  { %p150_p13 = por %p149_p12, %p148_p11 }
  0x22   :  { %95 = vlog2.f32 %v51_v6  ;;  %vm65_vm0 = vcmp.gt.f32.partialorder %v51_v6, 0.0  ;;  %vm66_vm1 = vcmp.gt.f32.partialorder %v52_v7, 0.0 }
  0x23   :  { %97 = vlog2.f32 %v52_v7  ;;  %p151_p0 = pnand %p150_p13, %p144_p10 }
  0x2f   :  { %v96_v8 = vpop.eup %95 }
  0x30   :  { %v98_v9 = vpop.eup %97  ;;  %v54_v10 = vmul.f32 0.6931472, %v96_v8 }
  0x31   :  { %v56_v11 = vmul.f32 0.6931472, %v98_v9 }
  0x32   :  { %v57_v12 = vmul.f32 2.1, %v54_v10 }
  0x33   :  { %v58_v13 = vmul.f32 2.1, %v56_v11 }
  0x34   :  { %v59_v14 = vadd.f32 0.5541264, %v57_v12 }
  0x35   :  { %v60_v15 = vadd.f32 0.5541264, %v58_v13 }
  0x36   :  { %v61_v16 = vmul.f32 1.442695, %v59_v14 }
  0x37   :  { %v63_v17 = vmul.f32 1.442695, %v60_v15 }
  0x38   :  { %99 = vpow2.f32 %v61_v16 }
  0x39   :  { %101 = vpow2.f32 %v63_v17 }
  0x45   :  { %v100_v18 = vpop.eup %99 }
  0x46   :  { %v102_v19 = vpop.eup %101  ;;  %v67_v20 = vsel %vm65_vm0, %v100_v18, 0.0 }
  0x47   :  { %v68_v21 = vsel %vm66_vm1, %v102_v19, 0.0 }
  0x48   :  { %v69_v22 = vadd.f32 %v68_v21, %v67_v20 }
  0x4a   :  { %72 = vst [vmem:[#allocation7] sm:$0xff] %v69_v22 }
  0x4b   :  { %154 = shalt.err (!%p151_p0)
}
  0x4c   :  { %82 = dma.vmem_to_hbm [thread:$0]  %s80_s1, 128, %s200_s2, [#allocation4]  }
  0x4d   :  { %167 = dma.done.wait [#allocation4], 128  }
  0x4e   :  { %168 = vsyncadd [#allocation4], 4294967168 }
  0x4f   :  { %86 = vsyncpa [#allocation3], 1 }
  0x50   :  { %87 = vsyncpa [#allocation6], 1 }
  0x51   :  { %88 = vsyncpa [#allocation4], 1 }

</bundles_post_ra>
